<compile_context>
chip_gen: v7x
topology: tpu7x:2x2x1
jax: 0.10.0
libtpu: 0.0.40
codegen_flags: <defaults>
</compile_context>

<pallas_src>
import numpy as np
import jax
import jax.numpy as jnp
from jax import lax
from jax.experimental import pallas as pl
from jax.experimental.pallas import tpu as pltpu


# ----------------------------------------------------------------------------
# Pallas kernel: out^T = ((x^T @ U) * lf) @ U^T, tiled over (f, j)
# ----------------------------------------------------------------------------
def spectral_gcn_kernel(xt_ref, u_ref, lf_ref, ot_ref, acc_ref):
    """Grid = (F//tf, N//tj).  Per (fi, j) step, with U_blk = U[:, j*tj:(j+1)*tj]:

        y    = x^T[fi-block, :] @ U_blk          (MXU, [tf, tj])
        y   *= lf[j-block]                       (VPU, diag filter)
        acc += y @ U_blk^T                       (MXU, [tf, N], trans-B dot --
                                                  no materialized U^T)

    On the last j step the [tf, N] lane-dense accumulator is stored.
    """
    j = pl.program_id(1)

    @pl.when(j == 0)
    def _init():
        acc_ref[...] = jnp.zeros_like(acc_ref)

    # Stage 1: (x^T) @ U column-block.
    y = jnp.dot(xt_ref[...], u_ref[...], preferred_element_type=jnp.float32)
    # Diagonal spectral filter: scale column jj by lambda_filter[j-block][jj].
    y = y * lf_ref[...]                      # lf_ref is [1, tj], broadcasts
    # Stage 2: accumulate y @ U_blk^T  (contract dim 1 of y with dim 1 of U_blk).
    acc_ref[...] += lax.dot_general(
        y, u_ref[...],
        dimension_numbers=(((1,), (1,)), ((), ())),
        preferred_element_type=jnp.float32)

    @pl.when(j == pl.num_programs(1) - 1)
    def _store():
        ot_ref[...] = acc_ref[...].astype(ot_ref.dtype)


def spectral_gcn_forward(U, lambda_filter, x, *, tf=None, tj=None):
    """spectral_x = U @ diag(lambda_filter) @ U^T @ x.

    U: [N, N] f32, lambda_filter: [N] f32, x: [N, F] f32 -> [N, F] f32.
    Computed transposed inside the kernel so the lane dimension is N.
    """
    N, F = x.shape
    U = U.astype(jnp.float32)
    x = x.astype(jnp.float32)
    lf = lambda_filter.astype(jnp.float32).reshape(1, N)

    # --- tile selection ------------------------------------------------------
    # j-tile (U column block / contraction of stage 2): 128-aligned always
    # (v5e MXU is 128-wide); 256-aligned once N is large enough to feed the
    # 256-wide v6e/v7x MXUs.  Falls back to full N for non-aligned sizes.
    if tj is None:
        if N % 256 == 0 and N >= 1024:
            tj = 256
        elif N % 128 == 0:
            tj = 128
        else:
            tj = N
    # f-tile (independent rows of x^T): splitting gives a genuine 'parallel'
    # grid axis (shardable across v7x's 2 TensorCores) at the cost of one
    # extra HBM pass over U per extra tile; keep a single tile for small F.
    if tf is None:
        tf = F // 2 if (F % 16 == 0 and F >= 64) else F
    assert N % tj == 0 and F % tf == 0, "tile sizes must divide (N, F)"

    xt = x.T  # [F, N]: lane-dense layout plumbing, done once outside the kernel

    out_t = pl.pallas_call(
        spectral_gcn_kernel,
        out_shape=jax.ShapeDtypeStruct((F, N), jnp.float32),
        grid_spec=pltpu.PrefetchScalarGridSpec(
            num_scalar_prefetch=0,
            grid=(F // tf, N // tj),
            in_specs=[
                pl.BlockSpec((tf, N), lambda fi, j: (fi, 0)),   # x^T rows (resident over j)
                pl.BlockSpec((N, tj), lambda fi, j: (0, j)),    # U column block (single pass)
                pl.BlockSpec((1, tj), lambda fi, j: (0, j)),    # lambda_filter slice
            ],
            out_specs=pl.BlockSpec((tf, N), lambda fi, j: (fi, 0)),
            scratch_shapes=[pltpu.VMEM((tf, N), jnp.float32)],
        ),
        compiler_params=pltpu.CompilerParams(
            dimension_semantics=("parallel", "arbitrary")),
    )(xt, U, lf)

    return out_t.T  # [N, F]


# ----------------------------------------------------------------------------
# Setup glue (mirrors SpectralGCN.__init__): normalized Laplacian + eigendecomp
# ----------------------------------------------------------------------------
def compute_normalized_laplacian_dense(adj):
    """L = I - D^(-1/2) A D^(-1/2), dense numpy version."""
    N = adj.shape[0]
    degrees = adj.sum(axis=1)
    eps = 1e-10
    d_inv_sqrt = np.power(degrees + eps, -0.5)
    d_inv_sqrt[np.isinf(d_inv_sqrt)] = 0.0
    D_inv_sqrt = np.diag(d_inv_sqrt)
    return np.eye(N) - D_inv_sqrt @ adj @ D_inv_sqrt


def build_filter_coefficients(lambdas, filter_params, num_bins):
    """Bin the normalized eigenvalues and gather filter params (plain JAX glue)."""
    lmin = jnp.min(lambdas)
    lmax = jnp.max(lambdas)
    denom = jnp.maximum(lmax - lmin, 1e-10)   # guard degenerate spectra
    lambdas_normalized = 2.0 * (lambdas - lmin) / denom
    bin_width = 2.0 / (num_bins - 1)
    indices = jnp.clip(
        jnp.floor(lambdas_normalized / bin_width).astype(jnp.int32), 0, num_bins - 1
    )
    return filter_params[indices]  # [N]


# ----------------------------------------------------------------------------
# Main
# ----------------------------------------------------------------------------
if __name__ == "__main__":
    N = 256            # number of graph nodes (2 contraction tiles of 128)
    num_features = 64  # input feature dim (2 parallel f-tiles of 32)
    num_bins = 15

    key = jax.random.PRNGKey(0)
    k_x, k_params, k_edges = jax.random.split(key, 3)

    # Deterministic node features and learnable filter params.
    x = jax.random.normal(k_x, (N, num_features), dtype=jnp.float32)
    filter_params = jax.random.normal(k_params, (num_bins,), dtype=jnp.float32)

    # Deterministic synthetic edge_index: ring graph + random chords, symmetric.
    src = jax.random.randint(k_edges, (512,), 0, N)
    dst = jax.random.randint(jax.random.fold_in(k_edges, 1), (512,), 0, N)
    src_np = np.asarray(src)
    dst_np = np.asarray(dst)
    adj = np.zeros((N, N), dtype=np.float64)
    adj[np.arange(N), (np.arange(N) + 1) % N] = 1.0
    adj[(np.arange(N) + 1) % N, np.arange(N)] = 1.0
    adj[src_np, dst_np] = 1.0
    adj[dst_np, src_np] = 1.0
    np.fill_diagonal(adj, 0.0)

    # Normalized Laplacian + spectral decomposition (one-time host setup).
    L = compute_normalized_laplacian_dense(adj)
    lambdas_np, U_np = np.linalg.eigh(L)  # symmetric -> real eigendecomposition
    lambdas = jnp.asarray(lambdas_np, dtype=jnp.float32)
    U = jnp.asarray(U_np, dtype=jnp.float32)

    # Frequency binning -> per-eigenvalue filter coefficient (glue).
    lambda_filter = build_filter_coefficients(lambdas, filter_params, num_bins)

    # Pallas kernel: the spectral filtering hot path.
    out = spectral_gcn_forward(U, lambda_filter, x)
    out = jax.block_until_ready(out)

    # Reference check in plain JAX.
    ref = U @ (jnp.diag(lambda_filter) @ (U.T @ x))
    assert out.shape == (N, num_features)
    assert jnp.allclose(out, ref, atol=1e-3, rtol=1e-3), "mismatch vs reference"

    print("KERNEL_OK")
</pallas_src>

<mosaic_0001>
module attributes {stable_mosaic.version = 11 : i64} {
  func.func @spectral_gcn_kernel(%arg0: i32, %arg1: i32, %arg2: memref<32x256xf32, #tpu.memory_space<vmem>>, %arg3: memref<256x128xf32, #tpu.memory_space<vmem>>, %arg4: memref<1x128xf32, #tpu.memory_space<vmem>>, %arg5: memref<32x256xf32, #tpu.memory_space<vmem>>, %arg6: memref<32x256xf32, #tpu.memory_space<vmem>>) attributes {dimension_semantics = [#tpu.dimension_semantics<parallel>, #tpu.dimension_semantics<arbitrary>], iteration_bounds = array<i64: 2, 2>, scalar_prefetch = 0 : i64, scratch_operands = 1 : i64, tpu.core_type = #tpu.core_type<tc>, window_params = [{transform_indices = @transform_0, window_bounds = array<i64: 32, 256>}, {transform_indices = @transform_1, window_bounds = array<i64: 256, 128>}, {transform_indices = @transform_2, window_bounds = array<i64: 1, 128>}, {transform_indices = @transform_3, window_bounds = array<i64: 32, 256>}]} {
    %c0_i32 = arith.constant 0 : i32
    %0 = arith.cmpi eq, %arg1, %c0_i32 : i32
    %1 = arith.extui %0 : i1 to i32
    %c0_i32_0 = arith.constant 0 : i32
    %2 = arith.cmpi ne, %1, %c0_i32_0 : i32
    scf.if %2 {
      %cst_14 = arith.constant 0.000000e+00 : f32
      %17 = vector.broadcast %cst_14 : f32 to vector<32x256xf32>
      %c0_15 = arith.constant 0 : index
      %c0_16 = arith.constant 0 : index
      %18 = vector.load %arg6[%c0_15, %c0_16] : memref<32x256xf32, #tpu.memory_space<vmem>>, vector<32x256xf32>
      tpu.vector_store %arg6[%c0_15, %c0_16], %17 {strides = array<i32>} : memref<32x256xf32, #tpu.memory_space<vmem>>, vector<32x256xf32>,
    } else {
    }
    %c0 = arith.constant 0 : index
    %c0_1 = arith.constant 0 : index
    %3 = vector.load %arg2[%c0, %c0_1] : memref<32x256xf32, #tpu.memory_space<vmem>>, vector<32x256xf32>
    %c0_2 = arith.constant 0 : index
    %c0_3 = arith.constant 0 : index
    %4 = vector.load %arg3[%c0_2, %c0_3] : memref<256x128xf32, #tpu.memory_space<vmem>>, vector<256x128xf32>
    %cst = arith.constant dense<0.000000e+00> : vector<32x128xf32>
    %5 = tpu.matmul %3, %4, %cst {dimension_numbers = #tpu.dot_dimension_numbers<[1], [0], [0], [1], [0, 0, 1, 1], [], []>} : vector<32x256xf32>, vector<256x128xf32>, vector<32x128xf32> -> vector<32x128xf32>
    %c0_4 = arith.constant 0 : index
    %c0_5 = arith.constant 0 : index
    %6 = vector.load %arg4[%c0_4, %c0_5] : memref<1x128xf32, #tpu.memory_space<vmem>>, vector<1x128xf32>
    %7 = vector.broadcast %6 : vector<1x128xf32> to vector<32x128xf32>
    %8 = arith.mulf %5, %7 : vector<32x128xf32>
    %c0_6 = arith.constant 0 : index
    %c0_7 = arith.constant 0 : index
    %9 = vector.load %arg6[%c0_6, %c0_7] : memref<32x256xf32, #tpu.memory_space<vmem>>, vector<32x256xf32>
    %c0_8 = arith.constant 0 : index
    %c0_9 = arith.constant 0 : index
    %10 = vector.load %arg3[%c0_8, %c0_9] : memref<256x128xf32, #tpu.memory_space<vmem>>, vector<256x128xf32>
    %cst_10 = arith.constant dense<0.000000e+00> : vector<32x256xf32>
    %11 = tpu.matmul %8, %10, %cst_10 {dimension_numbers = #tpu.dot_dimension_numbers<[1], [1], [0], [0], [0, 0, 1, 0], [], []>} : vector<32x128xf32>, vector<256x128xf32>, vector<32x256xf32> -> vector<32x256xf32>
    %12 = arith.addf %9, %11 : vector<32x256xf32>
    %c0_11 = arith.constant 0 : index
    %c0_12 = arith.constant 0 : index
    %13 = vector.load %arg6[%c0_11, %c0_12] : memref<32x256xf32, #tpu.memory_space<vmem>>, vector<32x256xf32>
    tpu.vector_store %arg6[%c0_11, %c0_12], %12 {strides = array<i32>} : memref<32x256xf32, #tpu.memory_space<vmem>>, vector<32x256xf32>,
    %c1_i32 = arith.constant 1 : i32
    %14 = arith.cmpi eq, %arg1, %c1_i32 : i32
    %15 = arith.extui %14 : i1 to i32
    %c0_i32_13 = arith.constant 0 : i32
    %16 = arith.cmpi ne, %15, %c0_i32_13 : i32
    scf.if %16 {
      %c0_14 = arith.constant 0 : index
      %c0_15 = arith.constant 0 : index
      %17 = vector.load %arg6[%c0_14, %c0_15] : memref<32x256xf32, #tpu.memory_space<vmem>>, vector<32x256xf32>
      %c0_16 = arith.constant 0 : index
      %c0_17 = arith.constant 0 : index
      %18 = vector.load %arg5[%c0_16, %c0_17] : memref<32x256xf32, #tpu.memory_space<vmem>>, vector<32x256xf32>
      tpu.vector_store %arg5[%c0_16, %c0_17], %17 {strides = array<i32>} : memref<32x256xf32, #tpu.memory_space<vmem>>, vector<32x256xf32>,
    } else {
    }
    return
  }
  func.func @transform_0(%arg0: i32, %arg1: i32) -> (i32, i32) {
    %c0_i32 = arith.constant 0 : i32
    %c0_i32_0 = arith.constant 0 : i32
    return %arg0, %c0_i32 : i32, i32
  }
  func.func @transform_1(%arg0: i32, %arg1: i32) -> (i32, i32) {
    %c0_i32 = arith.constant 0 : i32
    %c0_i32_0 = arith.constant 0 : i32
    return %c0_i32, %arg1 : i32, i32
  }
  func.func @transform_2(%arg0: i32, %arg1: i32) -> (i32, i32) {
    %c0_i32 = arith.constant 0 : i32
    %c0_i32_0 = arith.constant 0 : i32
    return %c0_i32, %arg1 : i32, i32
  }
  func.func @transform_3(%arg0: i32, %arg1: i32) -> (i32, i32) {
    %c0_i32 = arith.constant 0 : i32
    %c0_i32_0 = arith.constant 0 : i32
    return %arg0, %c0_i32 : i32, i32
  }
}

</mosaic_0001>

<bundles_post_ra>
// kernel: tpu_custom_call.1
= control target key start
LH: loop header
LB: loop body
LE: loop exit
PB: predicated region body
PF: predicated region fallthrough
CT: control target
= control target key end

     0   :  { %s1556_s0 = inlined_call_operand.hbm [shape: f32[64,256], index: 0, kind: input, shape index: {}]   ;;  %s1557_s1 = inlined_call_operand.hbm [shape: f32[256,256], index: 1, kind: input, shape index: {}]   ;;  %s1558_s2 = inlined_call_operand.vmem [shape: f32[1,256], index: 2, kind: input, shape index: {}]   ;;  %s1559_s3 = inlined_call_operand.hbm [shape: f32[64,256], index: 3, kind: output, shape index: {}]  }
   0x1   :  { %1569 = sst [smem:[#allocation15_spill]] %s1556_s0 }
   0x2   :  { %8 = vsyncpa [#allocation4], 0 }
   0x3   :  { %10 = vsyncpa [#allocation4 + $0x1], 0 }
   0x4   :  { %11 = vsyncpa [#allocation7], 0 }
   0x5   :  { %13 = vsyncpa [#allocation7 + $0x1], 0 }
   0x6   :  { %14 = vsyncpa [#allocation5], 0 }
   0x7   :  { %16 = vsyncpa [#allocation5 + $0x1], 0  ;;  %s1176_s12 = smov 0   ;;  %s1178_s13 = smov 0  }
   0x8   :  { %s1180_s14 = smov 0   ;;  %s1182_s15 = smov 0  }
   0x9   :  { %s1184_s16 = smov 0   ;;  %s1186_s17 = smov 0  }
   0xa   :  { %s1188_s18 = smov 0   ;;  %s1190_s19 = smov 0  }
   0xb   :  { %s1192_s20 = smov 0   ;;  %s1194_s21 = smov 0  }
   0xc   :  { %s1196_s22 = smov 0  }
   0xd LB: > { %1570 = sst [smem:[#allocation12_spill]] %s1116_s15  ;;  %s669_s23 = sadd.s32 4294967295, %s1144_s22   ;;  %s1144_s22 = sphi %s1196_s22, %s22_s22   ;;  %s1140_s21 = sphi %s1194_s21, %s1604_s21   ;;  %s1136_s20 = sphi %s1192_s20, %s1603_s20   ;;  %s1132_s19 = sphi %s1190_s19, %s1602_s19   ;;  %s1128_s18 = sphi %s1188_s18, %s1601_s18   ;;  %s1124_s17 = sphi %s1186_s17, %s1600_s17   ;;  %s1120_s16 = sphi %s1184_s16, %s1599_s16   ;;  %s1116_s15 = sphi %s1182_s15, %s1598_s15   ;;  %s1112_s14 = sphi %s1180_s14, %s1597_s14   ;;  %s1108_s13 = sphi %s1178_s13, %s1596_s13   ;;  %s1104_s12 = sphi %s1176_s12, %s1595_s12  }
   0xe   : > { %s670_s24 = sadd.s32 4294967294, %s1144_s22   ;;  %s34_s25 = sadd.s32 1, %s1140_s21 }
   0xf   : > { %p48_p0 = scmp.ne.s32.totalorder %s1124_s17, %s1120_s16  ;;  %p1561_p1 = scmp.eq.s32.totalorder %s1144_s22, 0 }
  0x10   : > { %p54_p2 = scmp.ne.s32.totalorder %s1120_s16, %s1116_s15  ;;  %p1240_p3 = scmp.eq.s32.totalorder %s669_s23, 0 }
  0x11   : > { %p1246_p4 = por %p1561_p1, %p48_p0  ;;  %p130_p5 = scmp.eq.s32.totalorder %s669_s23, 3 }
  0x12   : > { %p1252_p6 = por %p1240_p3, %p54_p2  ;;  %p136_p7 = scmp.eq.s32.totalorder %s670_s24, 3 }
  0x13   : > { %p1256_p8 = por %p130_p5, %p48_p0  ;;  %p1560_p10 = scmp.lt.s32.totalorder %s1144_s22, 4 }
  0x14   : > { %s1573_s29 = scalar_select %p1252_p6, 1, 0 }
  0x15   : > { %s1574_s30 = scalar_select %p1256_p8, 1, 0 }
  0x16   : > { %p1260_p9 = por %p136_p7, %p54_p2  ;;  %s156_s5 = sand.u32 1, %s1124_s17  }
  0x17   : > { %s693_s6 = sshll.u32 %s1140_s21, 10  ;;  %s673_s7 = sshll.u32 %s156_s5, 6 }
  0x18   : > { %s1575_s4 = scalar_select %p1260_p9, 1, 0 }
  0x19   : > { %s1577_s0 = sld [smem:[#allocation15_spill]]  ;;  %s160_s11 = scalar_lea.vmem [#allocation3], %s673_s7 }
  0x1a   : > { %1576 = sst [smem:[#allocation13_spill]] %s1575_s4  ;;  %s168_s23 = sshll.u32 %s160_s11, 4  ;;  %s1280_s23 = int_to_ptr.vmem [resolvable:$true] %s168_s23 }
  0x1b   : > { %p1276_p11 = pnand %p1560_p10, %p1246_p4  ;;  %s1282_s26 = scalar_lea.sflag [#allocation4], %s156_s5 }
  0x1d   : > { %p960_p13 = pneg %p1276_p11 }
  0x1f   : > { %s1270_s10 = scalar_lea.hbm %s1577_s0, %s693_s6  ;;  %s963_s8 = scalar_lea.hbm %s1577_s0, 2048 }
  0x20   : > { %s958_s6 = scalar_lea.hbm %s1270_s10, 1024  ;;  %p964_p4 = scmp.lt.u32.totalorder %s1270_s10, %s1577_s0 }
  0x21   : > { %p959_p12 = scmp.ne.s32.totalorder %s1270_s10, %s958_s6  ;;  %p965_p5 = scmp.lt.u32.totalorder %s963_s8, %s958_s6 }
  0x22   : > { %p967_p10 = scmp.lt.u32.totalorder %s958_s6, %s1270_s10 }
  0x23   : > { %p961_p0 = pnand %p960_p13, %p959_p12  ;;  %p966_p7 = por %p965_p5, %p964_p4 }
  0x25   : > { %p962_p2 = pneg %p961_p0  ;;  %p968_p1 = por %p967_p10, %p966_p7 }
  0x27   : > { %p969_p9 = pnand %p968_p1, %p962_p2 }
  0x29   : > { %972 = shalt.err (!%p969_p9)
}
  0x2a   : > { %s973_s5 = scalar_lea.vmem %s1280_s23, 1024  ;;  %s1146_s28 = smov [#allocation3]  }
  0x2b   : > { %p974_p12 = scmp.ne.s32.totalorder %s1280_s23, %s973_s5  ;;  %s978_s7 = sshll.u32 %s1146_s28, 4  ;;  %s979_s7 = int_to_ptr.vmem [resolvable:$false] %s978_s7 }
  0x2c   : > { %s980_s9 = scalar_lea.vmem %s979_s7, 2048  ;;  %p981_p6 = scmp.lt.s32.totalorder %s1280_s23, %s979_s7 }
  0x2d   : > { %p976_p0 = pnand %p974_p12, %p960_p13  ;;  %p982_p4 = scmp.lt.s32.totalorder %s980_s9, %s973_s5 }
  0x2f   : > { %p977_p8 = pneg %p976_p0  ;;  %p983_p5 = por %p982_p4, %p981_p6 }
  0x31   : > { %p984_p10 = pnand %p983_p5, %p977_p8 }
  0x33   : > { %987 = shalt.err (!%p984_p10)
}
  0x34   : > { %s1564_s6 = smov 256   ;;  %s1148_s8 = smov 16  }
  0x35   : > { %853 = dma.hbm_to_vmem [thread:$0]  (!%p1276_p11), %s1270_s10, 1024, %s1280_s23, %s1282_s26, %s1564_s6, %s1564_s6, %s1148_s8  }
  0x36   : > { %p679_p1 = scmp.ge.s32.totalorder %s1144_s22, 1  ;;  %p202_p6 = scmp.lt.s32.totalorder %s1144_s22, 5 }
  0x37   : > { %s31_s5 = sadd.s32 1, %s1136_s20  ;;  %s67_s28 = sadd.s32 1, %s1112_s14 }
  0x38   : > { %p1314_p8 = pnand %p679_p1, %p202_p6  ;;  %p32_p9 = scmp.ge.s32.totalorder %s31_s5, 2 }
  0x39   : > { %p74_p13 = scmp.ne.s32.totalorder %s1112_s14, %s1108_s13  ;;  %p80_p2 = scmp.ne.s32.totalorder %s1108_s13, %s1104_s12 }
  0x3a   : > { %s1606_s5 = smov (%p32_p9, %s31_s5), 0  ;;  %s1608_s25 = smov (!%p32_p9, %s34_s25), %s1140_s21 }
  0x3b   : > { %1580 = sst [smem:[#allocation14_spill]] %s1606_s5  ;;  %s64_s26 = ssub.s32 %s1136_s20, %s1606_s5 }
  0x3c   : > { %p1581_p11 = scmp.eq.s32.totalorder %s1144_s22, 0  ;;  %p36_p12 = scmp.ge.s32.totalorder %s1608_s25, 2 }
  0x3d   : > { %p65_p0 = scmp.eq.s32.totalorder %s64_s26, 0  ;;  %p1339_p4 = por %p80_p2, %p1240_p3 }
  0x3e   : > { %p1333_p7 = por %p74_p13, %p1581_p11  ;;  %s178_s12 = sand.u32 1, %s1112_s14  }
  0x3f   : > { %s1583_s23 = scalar_select %p1339_p4, 1, 0 }
  0x40   : > { %s1610_s25 = smov (%p36_p12, %s1608_s25), 0  ;;  %s677_s9 = sshll.u32 %s178_s12, 8 }
  0x41   : > { %s1347_s24 = scalar_select %p65_p0, %s1112_s14, %s67_s28  }
  0x42   : > { %s38_s7 = ssub.s32 %s1140_s21, %s1610_s25  ;;  %s678_s8 = sshll.u32 %s1136_s20, 7 }
  0x43   : > { %p39_p5 = scmp.eq.s32.totalorder %s38_s7, 0  ;;  %s1584_s6 = sadd.s32 1, %s1124_s17 }
  0x44   : > { %s1360_s27 = scalar_lea.hbm %s1557_s1, %s678_s8  ;;  %s182_s4 = scalar_lea.vmem [#allocation6], %s677_s9 }
  0x45   : > { %s1355_s0 = scalar_select %p39_p5, %s1124_s17, %s1584_s6  }
  0x46   : > { %s188_s15 = sshll.u32 %s182_s4, 4  ;;  %p1585_p3 = scmp.lt.s32.totalorder %s1144_s22, 4  ;;  %s1362_s15 = int_to_ptr.vmem [resolvable:$true] %s188_s15 }
  0x47   : > { %s1372_s6 = scalar_lea.sflag [#allocation7], %s178_s12  ;;  %s988_s5 = scalar_lea.hbm %s1360_s27, 4096 }
  0x48   : > { %p1368_p10 = pnand %p1585_p3, %p1333_p7  ;;  %p989_p1 = scmp.ne.s32.totalorder %s1360_s27, %s988_s5 }
  0x49   : > { %s993_s10 = scalar_lea.hbm %s1557_s1, 8192  ;;  %p994_p2 = scmp.lt.u32.totalorder %s1360_s27, %s1557_s1 }
  0x4a   : > { %p990_p6 = pneg %p1368_p10  ;;  %p995_p11 = scmp.lt.u32.totalorder %s993_s10, %s988_s5 }
  0x4b   : > { %p997_p12 = scmp.lt.u32.totalorder %s988_s5, %s1360_s27 }
  0x4c   : > { %p991_p9 = pnand %p990_p6, %p989_p1  ;;  %p996_p7 = por %p995_p11, %p994_p2 }
  0x4e   : > { %p992_p13 = pneg %p991_p9  ;;  %p998_p0 = por %p997_p12, %p996_p7 }
  0x50   : > { %p999_p5 = pnand %p998_p0, %p992_p13 }
  0x52   : > { %1002 = shalt.err (!%p999_p5)
}
  0x53   : > { %s1003_s12 = scalar_lea.vmem %s1362_s15, 4096  ;;  %s1149_s26 = smov [#allocation6]  }
  0x54   : > { %p1004_p3 = scmp.ne.s32.totalorder %s1362_s15, %s1003_s12  ;;  %s1008_s4 = sshll.u32 %s1149_s26, 4  ;;  %s1009_s4 = int_to_ptr.vmem [resolvable:$false] %s1008_s4 }
  0x55   : > { %s1010_s7 = scalar_lea.vmem %s1009_s4, 8192  ;;  %p1011_p4 = scmp.lt.s32.totalorder %s1362_s15, %s1009_s4 }
  0x56   : > { %p1006_p1 = pnand %p1004_p3, %p990_p6  ;;  %p1012_p2 = scmp.lt.s32.totalorder %s1010_s7, %s1003_s12 }
  0x58   : > { %p1007_p9 = pneg %p1006_p1  ;;  %p1013_p11 = por %p1012_p2, %p1011_p4 }
  0x5a   : > { %p1014_p7 = pnand %p1013_p11, %p1007_p9 }
  0x5c   : > { %1017 = shalt.err (!%p1014_p7)
}
  0x5d   : > { %s1150_s5 = smov 128   ;;  %s1151_s10 = smov 8  }
  0x5e   : > { %s1587_s9 = smov 256   ;;  %206 = sbr.rel (%p1314_p8) target bundleno = 631 (0x277), region = 32 }
  0x5f   : > { %856 = dma.hbm_to_vmem [thread:$0]  (!%p1368_p10), %s1360_s27, 4096, %s1362_s15, %s1372_s6, %s1587_s9, %s1150_s5, %s1151_s10  }
  0x60   : > { %s1404_s8 = sand.u32 (!%p1314_p8), 1, %s1120_s16   ;;  %p1588_p4 = scmp.ne.s32.totalorder (!%p1314_p8), %s1573_s29, 0 }
  0x61   : > { %s680_s12 = sshll.u32 (!%p1314_p8), %s1404_s8, 6  ;;  %s209_s26 = scalar_lea.sflag (!%p1314_p8), [#allocation4], %s1404_s8 }
  0x62   : > { %s1408_s4 = scalar_lea.vmem (!%p1314_p8), [#allocation3], %s680_s12 }
  0x65   : > { %1091 = dma.done.wait (%p1588_p4), %s209_s26, 1024  }
  0x66   : > { %1093 = vsyncadd (%p1588_p4), %s209_s26, 4294966272  ;;  %s217_s15 = sand.u32 1, %s1108_s13   ;;  %p1589_p8 = scmp.ne.s32.totalorder %s1583_s23, 0 }
  0x67   : > { %s681_s11 = sshll.u32 %s217_s15, 8  ;;  %s218_s27 = scalar_lea.sflag [#allocation7], %s217_s15 }
  0x68   : > { %s1415_s28 = scalar_lea.vmem [#allocation6], %s681_s11 }
  0x69   : > { %1095 = dma.done.wait (%p1589_p8), %s218_s27, 4096  }
  0x6a   : > { %1097 = vsyncadd (%p1589_p8), %s218_s27, 4294963200  ;;  %p253_p10 = scmp.lt.s32.totalorder %s1128_s18, 1  ;;  %s1429_s10 = scalar_lea.vmem [#allocation8], %s680_s12 }
  0x6b   : > { %p683_p6 = scmp.ne.s32.totalorder %s1128_s18, 0 }
  0x6c   : > { %s1423_s6 = scalar_select %p253_p10, %s1128_s18, 1 }
  0x6d   : > { %260 = sbr.rel (%p683_p6) target bundleno = 116 (0x74), region = 44  ;;  %v1152_v0 = vmov (!%p683_p6), 0.0  }
  0x6e   : > { %s255_s5 = scalar_lea.vmem %s1558_s2, %s1423_s6  ;;  %261 = vst [vmem:[#allocation2] sm:$0xff] (!%p683_p6), %v1152_v0  ;;  %262 = vst [vmem:[#allocation2 + $0x8] sm:$0xff] (!%p683_p6), %v1152_v0 }
  0x6f   : > { %263 = vst [vmem:[#allocation2 + $0x10] sm:$0xff] (!%p683_p6), %v1152_v0  ;;  %264 = vst [vmem:[#allocation2 + $0x18] sm:$0xff] (!%p683_p6), %v1152_v0 }
  0x70   : > { %265 = vst [vmem:[#allocation2 + $0x20] sm:$0xff] (!%p683_p6), %v1152_v0  ;;  %266 = vst [vmem:[#allocation2 + $0x28] sm:$0xff] (!%p683_p6), %v1152_v0 }
  0x71   : > { %267 = vst [vmem:[#allocation2 + $0x30] sm:$0xff] (!%p683_p6), %v1152_v0  ;;  %268 = vst [vmem:[#allocation2 + $0x38] sm:$0xff] (!%p683_p6), %v1152_v0 }
  0x74 PF: > { %v293_v1 = vld [vmem:[%s1415_s28 + $0x80] sm:$0xff]  ;;  %v294_v2 = vld [vmem:[%s1415_s28 + $0x88] sm:$0xff]  ;;  %v295_v6 = vld [vmem:[%s1415_s28 + $0x90] sm:$0xff]  ;;  %p685_p13 = scmp.ne.s32.totalorder %s1128_s18, 1 }
  0x75   : > { %v277_v3 = vld [vmem:[%s1415_s28] sm:$0xff]  ;;  %v780_v4 = vpack.c.bf16 %v294_v2, %v293_v1  ;;  %v278_v5 = vld [vmem:[%s1415_s28 + $0x8] sm:$0xff]  ;;  %v296_v7 = vld [vmem:[%s1415_s28 + $0x98] sm:$0xff] }
  0x76   : > { %v782_v8 = vpack.c.bf16 %v278_v5, %v277_v3  ;;  %v784_v9 = vpack.c.bf16 %v296_v7, %v295_v6  ;;  %v279_v10 = vld [vmem:[%s1415_s28 + $0x10] sm:$0xff]  ;;  %v280_v11 = vld [vmem:[%s1415_s28 + $0x18] sm:$0xff]  ;;  %v297_v12 = vld [vmem:[%s1415_s28 + $0xa0] sm:$0xff] }
  0x77   : > { %781 = vmatprep.subr.bf16.mxu0 %v780_v4  ;;  %v298_v13 = vld [vmem:[%s1415_s28 + $0xa8] sm:$0xff]  ;;  %813 = vmatprep.subr.bf16.mxu1 %v780_v4  ;;  %v786_v14 = vpack.c.bf16 %v280_v11, %v279_v10  ;;  %v281_v16 = vld [vmem:[%s1415_s28 + $0x20] sm:$0xff]  ;;  %v299_v18 = vld [vmem:[%s1415_s28 + $0xb0] sm:$0xff] }
  0x78   : > { %783 = vmatpush3.bf16.msra.mxu0 %v782_v8  ;;  %815 = vmatpush3.bf16.xpose.msra.mxu1 %v782_v8  ;;  %v788_v15 = vpack.c.bf16 %v298_v13, %v297_v12  ;;  %v282_v17 = vld [vmem:[%s1415_s28 + $0x28] sm:$0xff]  ;;  %v300_v19 = vld [vmem:[%s1415_s28 + $0xb8] sm:$0xff]  ;;  %v283_v22 = vld [vmem:[%s1415_s28 + $0x30] sm:$0xff] }
  0x79   : > { %785 = vmatprep.subr.bf16.mxu0 %v784_v9  ;;  %817 = vmatprep.subr.bf16.mxu1 %v784_v9  ;;  %v790_v20 = vpack.c.bf16 %v282_v17, %v281_v16  ;;  %v792_v21 = vpack.c.bf16 %v300_v19, %v299_v18  ;;  %v284_v23 = vld [vmem:[%s1415_s28 + $0x38] sm:$0xff]  ;;  %v301_v24 = vld [vmem:[%s1415_s28 + $0xc0] sm:$0xff]  ;;  %v302_v25 = vld [vmem:[%s1415_s28 + $0xc8] sm:$0xff] }
  0x7a   : > { %v270_v26 = vld [vmem:[%s1408_s4 + $0x8] sm:$0xff]  ;;  %v794_v27 = vpack.c.bf16 %v284_v23, %v283_v22  ;;  %v796_v28 = vpack.c.bf16 %v302_v25, %v301_v24  ;;  %v285_v29 = vld [vmem:[%s1415_s28 + $0x40] sm:$0xff]  ;;  %v303_v31 = vld [vmem:[%s1415_s28 + $0xd0] sm:$0xff] }
  0x7b   : > { %373 = vmatprep.mubr.f32.mxu0 %v270_v26  ;;  %v286_v30 = vld [vmem:[%s1415_s28 + $0x48] sm:$0xff]  ;;  %v304_v32 = vld [vmem:[%s1415_s28 + $0xd8] sm:$0xff]  ;;  %v287_v35 = vld [vmem:[%s1415_s28 + $0x50] sm:$0xff] }
  0x7c   : > { %787 = vmatpush3.bf16.msra.mxu0 %v786_v14  ;;  %v798_v33 = vpack.c.bf16 %v286_v30, %v285_v29  ;;  %v800_v34 = vpack.c.bf16 %v304_v32, %v303_v31  ;;  %v288_v36 = vld [vmem:[%s1415_s28 + $0x58] sm:$0xff]  ;;  %v305_v37 = vld [vmem:[%s1415_s28 + $0xe0] sm:$0xff]  ;;  %v306_v38 = vld [vmem:[%s1415_s28 + $0xe8] sm:$0xff] }
  0x7d   : > { %789 = vmatprep.subr.bf16.mxu0 %v788_v15  ;;  %v802_v39 = vpack.c.bf16 %v288_v36, %v287_v35  ;;  %v804_v40 = vpack.c.bf16 %v306_v38, %v305_v37  ;;  %v289_v41 = vld [vmem:[%s1415_s28 + $0x60] sm:$0xff]  ;;  %v290_v42 = vld [vmem:[%s1415_s28 + $0x68] sm:$0xff]  ;;  %v307_v43 = vld [vmem:[%s1415_s28 + $0xf0] sm:$0xff] }
  0x7e   : > { %v308_v44 = vld [vmem:[%s1415_s28 + $0xf8] sm:$0xff]  ;;  %v806_v45 = vpack.c.bf16 %v290_v42, %v289_v41  ;;  %v291_v47 = vld [vmem:[%s1415_s28 + $0x70] sm:$0xff]  ;;  %v269_v50 = vld [vmem:[%s1408_s4] sm:$0xff] }
  0x7f   : > { %v808_v46 = vpack.c.bf16 %v308_v44, %v307_v43  ;;  %v292_v48 = vld [vmem:[%s1415_s28 + $0x78] sm:$0xff]  ;;  %v271_v52 = vld [vmem:[%s1408_s4 + $0x10] sm:$0xff]  ;;  %v274_v53 = vld [vmem:[%s1408_s4 + $0x28] sm:$0xff] }
  0x80   : > { %791 = vmatpush3.bf16.msra.mxu0 %v790_v20  ;;  %819 = vmatpush3.bf16.xpose.msra.mxu1 %v786_v14  ;;  %v810_v49 = vpack.c.bf16 %v292_v48, %v291_v47  ;;  %v272_v51 = vld [vmem:[%s1408_s4 + $0x18] sm:$0xff]  ;;  %v273_v54 = vld [vmem:[%s1408_s4 + $0x20] sm:$0xff]  ;;  %v275_v56 = vld [vmem:[%s1408_s4 + $0x30] sm:$0xff] }
  0x81   : > { %793 = vmatprep.subr.bf16.mxu0 %v792_v21  ;;  %821 = vmatprep.subr.bf16.mxu1 %v788_v15  ;;  %v276_v55 = vld [vmem:[%s1408_s4 + $0x38] sm:$0xff]  ;;  %v684_v59 = vld [vmem:[%s255_s5] ss:$0 sm:$0xff]  ;;  %v406_v11 = vld [vmem:[#allocation2 + $0x8] sm:$0xff] }
  0x82   : > { %v405_v10 = vld [vmem:[#allocation2] sm:$0xff]  ;;  %v407_v16 = vld [vmem:[#allocation2 + $0x10] sm:$0xff]  ;;  %v408_v17 = vld [vmem:[#allocation2 + $0x18] sm:$0xff] }
  0x83   : > { %v409_v22 = vld [vmem:[#allocation2 + $0x20] sm:$0xff]  ;;  %v410_v23 = vld [vmem:[#allocation2 + $0x28] sm:$0xff]  ;;  %v412_v29 = vld [vmem:[#allocation2 + $0x38] sm:$0xff] }
  0x84   : > { %795 = vmatpush3.bf16.msra.mxu0 %v794_v27 }
  0x85   : > { %797 = vmatprep.subr.bf16.mxu0 %v796_v28 }
  0x88   : > { %799 = vmatpush3.bf16.msra.mxu0 %v798_v33  ;;  %823 = vmatpush3.bf16.xpose.msra.mxu1 %v790_v20 }
  0x89   : > { %801 = vmatprep.subr.bf16.mxu0 %v800_v34  ;;  %825 = vmatprep.subr.bf16.mxu1 %v792_v21 }
  0x8c   : > { %803 = vmatpush3.bf16.msra.mxu0 %v802_v39 }
  0x8d   : > { %805 = vmatprep.subr.bf16.mxu0 %v804_v40 }
  0x90   : > { %807 = vmatpush3.bf16.msra.mxu0 %v806_v45  ;;  %827 = vmatpush3.bf16.xpose.msra.mxu1 %v794_v27 }
  0x91   : > { %809 = vmatprep.subr.bf16.mxu0 %v808_v46  ;;  %829 = vmatprep.subr.bf16.mxu1 %v796_v28  ;;  %v411_v28 = vld [vmem:[#allocation2 + $0x30] sm:$0xff] }
  0x94   : > { %811 = vmatpush3.bf16.msra.mxu0 %v810_v49 }
  0x97   : > { %374 = vmatmul.mubr.f32.vlgmr.msra.gmra.mrb[0].mxu0 %v269_v50 }
  0x98   : > { %378 = vmatprep.mubr.f32.mxu0 %v272_v51  ;;  %831 = vmatpush3.bf16.xpose.msra.mxu1 %v798_v33 }
  0x99   : > { %833 = vmatprep.subr.bf16.mxu1 %v800_v34 }
  0x9b   : > { %379 = vmatmul.mubr.f32.gmra.mrb[2].mxu0 %v271_v52 }
  0x9c   : > { %383 = vmatprep.mubr.f32.mxu0 %v274_v53 }
  0x9f   : > { %384 = vmatmul.mubr.f32.gmra.mrb[4].mxu0 %v273_v54 }
  0xa0   : > { %388 = vmatprep.mubr.f32.mxu0 %v276_v55  ;;  %835 = vmatpush3.bf16.xpose.msra.mxu1 %v802_v39 }
  0xa1   : > { %837 = vmatprep.subr.bf16.mxu1 %v804_v40 }
  0xa3   : > { %389 = vmatmul.mubr.f32.gmra.mrb[6].mxu0 %v275_v56 }
  0xa8   : > { %839 = vmatpush3.bf16.xpose.msra.mxu1 %v806_v45 }
  0xa9   : > { %841 = vmatprep.subr.bf16.mxu1 %v808_v46 }
  0xb0   : > { %843 = vmatpush3.bf16.xpose.msra.mxu1 %v810_v49 }
 0x16a   : > { %v728_v57 = vpop.f32.mrb[0].mxu0 }
 0x16b   : > { %v729_v58 = vpop.f32.mrb[1].mxu0 }
 0x16c   : > { %v730_v60 = vadd.f32 %v729_v58, %v728_v57 }
 0x16e   : > { %v731_v61 = vpop.f32.mrb[2].mxu0  ;;  %v401_v62 = vmul.f32 %v730_v60, %v684_v59 }
 0x16f   : > { %v732_v63 = vpop.f32.mrb[3].mxu0 }
 0x170   : > { %v733_v0 = vadd.f32 %v732_v63, %v731_v61  ;;  %772 = vmatprep.mubr.f32.mxu1 %v401_v62 }
 0x171   : > { %773 = vmatmul.mubr.f32.vlgmr.msra.gmra.mrb[0].mxu1 %v401_v62 }
 0x172   : > { %v402_v1 = vmul.f32 %v733_v0, %v684_v59  ;;  %v734_v2 = vpop.f32.mrb[4].mxu0 }
 0x173   : > { %v735_v3 = vpop.f32.mrb[5].mxu0 }
 0x174   : > { %v736_v4 = vadd.f32 %v735_v3, %v734_v2  ;;  %774 = vmatprep.mubr.f32.mxu1 %v402_v1 }
 0x175   : > { %775 = vmatmul.mubr.f32.gmra.mrb[2].mxu1 %v402_v1 }
 0x176   : > { %v403_v5 = vmul.f32 %v736_v4, %v684_v59  ;;  %v737_v6 = vpop.f32.mrb[6].mxu0 }
 0x177   : > { %v738_v7 = vpop.f32.mrb[7].mxu0 }
 0x178   : > { %v739_v8 = vadd.f32 %v738_v7, %v737_v6  ;;  %776 = vmatprep.mubr.f32.mxu1 %v403_v5 }
 0x179   : > { %777 = vmatmul.mubr.f32.gmra.mrb[4].mxu1 %v403_v5 }
 0x17a   : > { %v404_v9 = vmul.f32 %v739_v8, %v684_v59 }
 0x17c   : > { %778 = vmatprep.mubr.f32.mxu1 %v404_v9 }
 0x17d   : > { %779 = vmatmul.mubr.f32.gmra.mrb[6].mxu1 %v404_v9 }
 0x244   : > { %v479_v12 = vpop.f32.mrb[0].mxu1 }
 0x245   : > { %v502_v13 = vadd.f32 %v479_v12, %v405_v10  ;;  %v481_v14 = vpop.f32.mrb[1].mxu1 }
 0x246   : > { %v503_v15 = vadd.f32 %v481_v14, %v406_v11 }
 0x247   : > { %510 = vst [vmem:[#allocation2] sm:$0xff] %v502_v13 }
 0x248   : > { %511 = vst [vmem:[#allocation2 + $0x8] sm:$0xff] %v503_v15  ;;  %v485_v18 = vpop.f32.mrb[2].mxu1 }
 0x249   : > { %v504_v19 = vadd.f32 %v485_v18, %v407_v16  ;;  %v487_v20 = vpop.f32.mrb[3].mxu1 }
 0x24a   : > { %v505_v21 = vadd.f32 %v487_v20, %v408_v17 }
 0x24b   : > { %512 = vst [vmem:[#allocation2 + $0x10] sm:$0xff] %v504_v19 }
 0x24c   : > { %513 = vst [vmem:[#allocation2 + $0x18] sm:$0xff] %v505_v21  ;;  %v491_v24 = vpop.f32.mrb[4].mxu1 }
 0x24d   : > { %v506_v25 = vadd.f32 %v491_v24, %v409_v22  ;;  %v493_v26 = vpop.f32.mrb[5].mxu1 }
 0x24e   : > { %v507_v27 = vadd.f32 %v493_v26, %v410_v23  ;;  %521 = sbr.rel (%p685_p13) target bundleno = 605 (0x25d), region = 48  ;;  %v522_v34 = vld [vmem:[#allocation2] sm:$0xff] (!%p685_p13) }
 0x24f   : > { %514 = vst [vmem:[#allocation2 + $0x20] sm:$0xff] %v506_v25  ;;  %v523_v35 = vld [vmem:[#allocation2 + $0x8] sm:$0xff] (!%p685_p13)  ;;  %530 = vst [vmem:[%s1429_s10] sm:$0xff] (!%p685_p13), %v522_v34 }
 0x250   : > { %515 = vst [vmem:[#allocation2 + $0x28] sm:$0xff] %v507_v27  ;;  %v497_v30 = vpop.f32.mrb[6].mxu1  ;;  %531 = vst [vmem:[%s1429_s10 + $0x8] sm:$0xff] (!%p685_p13), %v523_v35 }
 0x251   : > { %v508_v31 = vadd.f32 %v497_v30, %v411_v28  ;;  %v499_v32 = vpop.f32.mrb[7].mxu1 }
 0x252   : > { %v509_v33 = vadd.f32 %v499_v32, %v412_v29  ;;  %v524_v36 = vld [vmem:[#allocation2 + $0x10] sm:$0xff] (!%p685_p13) }
 0x253   : > { %516 = vst [vmem:[#allocation2 + $0x30] sm:$0xff] %v508_v31  ;;  %532 = vst [vmem:[%s1429_s10 + $0x10] sm:$0xff] (!%p685_p13), %v524_v36  ;;  %v525_v37 = vld [vmem:[#allocation2 + $0x18] sm:$0xff] (!%p685_p13) }
 0x254   : > { %517 = vst [vmem:[#allocation2 + $0x38] sm:$0xff] %v509_v33  ;;  %533 = vst [vmem:[%s1429_s10 + $0x18] sm:$0xff] (!%p685_p13), %v525_v37 }
 0x256   : > { %v526_v38 = vld [vmem:[#allocation2 + $0x20] sm:$0xff] }
 0x257   : > { %v527_v39 = vld [vmem:[#allocation2 + $0x28] sm:$0xff]  ;;  %534 = vst [vmem:[%s1429_s10 + $0x20] sm:$0xff] %v526_v38 }
 0x258   : > { %535 = vst [vmem:[%s1429_s10 + $0x28] sm:$0xff] %v527_v39 }
 0x25a   : > { %v528_v40 = vld [vmem:[#allocation2 + $0x30] sm:$0xff] }
 0x25b   : > { %v529_v41 = vld [vmem:[#allocation2 + $0x38] sm:$0xff]  ;;  %536 = vst [vmem:[%s1429_s10 + $0x30] sm:$0xff] %v528_v40 }
 0x25c   : > { %537 = vst [vmem:[%s1429_s10 + $0x38] sm:$0xff] %v529_v41 }
 0x25d PF: > { %s695_s18 = sshll.u32 %s1132_s19, 10  ;;  %s553_s15 = sshll.u32 %s1429_s10, 4  ;;  %s1493_s15 = int_to_ptr.vmem [resolvable:$true] %s553_s15 }
 0x25e   : > { %s1490_s4 = scalar_lea.hbm %s1559_s3, %s695_s18  ;;  %s539_s11 = scalar_lea.sflag [#allocation5], %s1404_s8 }
 0x25f   : > { %s1018_s27 = scalar_lea.vmem %s1493_s15, 1024  ;;  %p1590_p0 = scmp.ne.s32.totalorder %s1574_s30, 0 }
 0x260   : > { %p1019_p12 = scmp.ne.s32.totalorder %s1493_s15, %s1018_s27  ;;  %s1153_s28 = smov [#allocation8]  }
 0x261   : > { %s1022_s6 = sshll.u32 %s1153_s28, 4  ;;  %s1023_s6 = int_to_ptr.vmem [resolvable:$false] %s1022_s6 }
 0x262   : > { %p1020_p5 = pnand %p1019_p12, %p1590_p0  ;;  %s1024_s19 = scalar_lea.vmem %s1023_s6, 2048 }
 0x263   : > { %p1025_p1 = scmp.lt.s32.totalorder %s1493_s15, %s1023_s6  ;;  %p1026_p9 = scmp.lt.s32.totalorder %s1024_s19, %s1018_s27 }
 0x264   : > { %p1021_p3 = pneg %p1020_p5 }
 0x265   : > { %p1027_p2 = por %p1026_p9, %p1025_p1 }
 0x267   : > { %p1028_p11 = pnand %p1027_p2, %p1021_p3 }
 0x269   : > { %1031 = shalt.err (!%p1028_p11)
}
 0x26a   : > { %s1032_s29 = scalar_lea.hbm %s1490_s4, 1024  ;;  %s1036_s10 = scalar_lea.hbm %s1559_s3, 2048 }
 0x26b   : > { %p1033_p7 = scmp.ne.s32.totalorder %s1490_s4, %s1032_s29  ;;  %p1037_p10 = scmp.lt.u32.totalorder %s1490_s4, %s1559_s3 }
 0x26c   : > { %p1038_p6 = scmp.lt.u32.totalorder %s1036_s10, %s1032_s29  ;;  %p1040_p12 = scmp.lt.u32.totalorder %s1032_s29, %s1490_s4 }
 0x26d   : > { %p1034_p4 = pnand %p1033_p7, %p1590_p0 }
 0x26e   : > { %p1039_p13 = por %p1038_p6, %p1037_p10 }
 0x26f   : > { %p1035_p8 = pneg %p1034_p4 }
 0x270   : > { %p1041_p5 = por %p1040_p12, %p1039_p13 }
 0x272   : > { %p1042_p3 = pnand %p1041_p5, %p1035_p8 }
 0x274   : > { %1045 = shalt.err (!%p1042_p3)
}
 0x275   : > { %s1154_s18 = smov 256   ;;  %s1155_s12 = smov 16  }
 0x276   : > { %848 = dma.vmem_to_hbm [thread:$0]  (%p1590_p0), %s1493_s15, 1024, %s1490_s4, %s539_s11, %s1154_s18, %s1154_s18, %s1155_s12  }
 0x277 PF: > { %s1591_s26 = sld [smem:[#allocation12_spill]]  ;;  %s1592_s27 = sld [smem:[#allocation13_spill]] }
 0x278   : > { %p862_p1 = scmp.ge.s32.totalorder %s1144_s22, 2 }
 0x27d   : > { %s568_s28 = sand.u32 1, %s1591_s26   ;;  %p1593_p9 = scmp.ne.s32.totalorder %s1592_s27, 0 }
 0x27e   : > { %s569_s6 = scalar_lea.sflag [#allocation5], %s568_s28 }
 0x27f   : > { %p858_p2 = pnand %p862_p1, %p1593_p9 }
 0x281   : > { %1099 = dma.done.wait (!%p858_p2), %s569_s6, 1024  }
 0x282   : > { %1101 = vsyncadd (!%p858_p2), %s569_s6, 4294966272  ;;  %s22_s22 = sadd.s32 1, %s1144_s22   ;;  %s1594_s30 = sld [smem:[#allocation14_spill]] }
 0x283   : > { %p19_p11 = scmp.ge.s32.totalorder %s22_s22, 6   ;;  %s1595_s12 = smov %s1108_s13 }
 0x284   : > { %s1596_s13 = smov %s1112_s14  ;;  %s1597_s14 = smov %s1347_s24 }
 0x285   : > { %s1598_s15 = smov %s1120_s16  ;;  %s1599_s16 = smov %s1124_s17 }
 0x286   : > { %s1600_s17 = smov %s1355_s0  ;;  %s1601_s18 = smov %s1136_s20 }
 0x287   : > { %s1602_s19 = smov %s1140_s21  ;;  %s1604_s21 = smov %s1610_s25 }
 0x288   : > { %s1603_s20 = smov %s1594_s30  ;;  %21 = sbr.rel (!%p19_p11) target bundleno = 13 (0xd), region = 101 }
 0x28f   :  { %574 = vsyncpa [#allocation4], 1 }
 0x290   :  { %576 = vsyncpa [#allocation4 + $0x1], 1 }
 0x291   :  { %577 = vsyncpa [#allocation7], 1 }
 0x292   :  { %579 = vsyncpa [#allocation7 + $0x1], 1 }
 0x293   :  { %580 = vsyncpa [#allocation5], 1 }
 0x294   :  { %582 = vsyncpa [#allocation5 + $0x1], 1 }

</bundles_post_ra>
